<compile_context>
chip_gen: v7x
topology: tpu7x:2x2x1
jax: 0.10.0
libtpu: 0.0.40
codegen_flags: <defaults>
</compile_context>

<pallas_src>
import functools
import math

import numpy as np

import jax
import jax.numpy as jnp
from jax import lax
from jax.experimental import pallas as pl
from jax.experimental.pallas import tpu as pltpu

_MASK_FILL = -9000000000000000.0  # matches torch masked_fill value


# --------------------------------------------------------------------------- kernel

def _sdp_tile(q, k, v, mask, x_ref, attn_ref, *, scale, matmul_dtype, recip_approx):
    # Fold 1/sqrt(dim_k) into Q (tq*D mults instead of tq*Lk), in f32 for accuracy.
    q = q.astype(jnp.float32) * jnp.float32(scale)
    if matmul_dtype is not None:
        q = q.astype(matmul_dtype)
        if k.dtype != matmul_dtype:
            k = k.astype(matmul_dtype)
    elif k.dtype != jnp.float32:
        k = k.astype(jnp.float32)

    # QK^T without materializing K^T: contract dim 1 of Q with dim 1 of K (MXU NT).
    s = lax.dot_general(
        q, k,
        dimension_numbers=(((1,), (1,)), ((), ())),
        preferred_element_type=jnp.float32,
    )

    if mask is not None:
        s = jnp.where(mask == 0, jnp.float32(_MASK_FILL), s)

    # Row softmax over keys, f32 throughout.
    m = jnp.max(s, axis=-1, keepdims=True)
    p = jnp.exp(s - m)
    denom = jnp.sum(p, axis=-1, keepdims=True)
    attn = p * pl.reciprocal(denom, approx=recip_approx)

    if matmul_dtype is not None:
        attn_lp = attn.astype(matmul_dtype)          # single low-precision cast
        pv_lhs = attn_lp
        if attn_ref.dtype == matmul_dtype:
            attn_ref[...] = attn_lp                  # reuse the cast for the store
        else:
            attn_ref[...] = attn.astype(attn_ref.dtype)
        pv_rhs = v if v.dtype == matmul_dtype else v.astype(matmul_dtype)
    else:
        pv_lhs = attn
        attn_ref[...] = attn.astype(attn_ref.dtype)
        pv_rhs = v if v.dtype == jnp.float32 else v.astype(jnp.float32)

    x_ref[...] = jnp.dot(
        pv_lhs, pv_rhs, preferred_element_type=jnp.float32
    ).astype(x_ref.dtype)


def _sdp_kernel_nomask(q_ref, k_ref, v_ref, x_ref, attn_ref, *,
                       scale, matmul_dtype, recip_approx):
    _sdp_tile(q_ref[...], k_ref[...], v_ref[...], None, x_ref, attn_ref,
              scale=scale, matmul_dtype=matmul_dtype, recip_approx=recip_approx)


def _sdp_kernel_mask(q_ref, k_ref, v_ref, mask_ref, x_ref, attn_ref, *,
                     scale, matmul_dtype, recip_approx):
    _sdp_tile(q_ref[...], k_ref[...], v_ref[...], mask_ref[...], x_ref, attn_ref,
              scale=scale, matmul_dtype=matmul_dtype, recip_approx=recip_approx)


# --------------------------------------------------------------------- tiling helpers

def _vmem_capacity_bytes():
    try:
        info = pltpu.get_tpu_info()
        cap = getattr(info, "vmem_capacity_bytes", None)
        if cap:
            return int(cap)
    except Exception:
        pass
    return 64 * 1024 * 1024  # conservative default (v7x per-TensorCore)


def _vmem_footprint(tq, Lk, D, Dv, *, q_bytes, kv_bytes, x_bytes, attn_bytes,
                    mask_bytes, kv_buffers):
    """Approximate VMEM bytes for one pipelined grid step."""
    resident = kv_buffers * Lk * (D + Dv) * kv_bytes                 # K + V
    per_step = tq * (D * q_bytes + Dv * x_bytes + Lk * (attn_bytes + mask_bytes))
    temps = 2 * tq * Lk * 4                                          # s and exp(s), f32
    return resident + 2 * per_step + temps                           # inputs/outputs 2x-buffered


def _pick_q_tile(Lq, Lk, D, Dv, *, budget, **fp_kwargs):
    """Largest multiple-of-8 divisor of Lq whose footprint fits `budget`,
    capped at Lq//2 (>=2 grid steps keeps both v7x TensorCores busy)."""
    cap = Lq // 2 if Lq >= 16 else Lq
    cands = [t for t in range(8, min(cap, 512) + 1, 8) if Lq % t == 0]
    for t in sorted(cands, reverse=True):
        if _vmem_footprint(t, Lk, D, Dv, kv_buffers=1, **fp_kwargs) <= budget:
            return t
    if cands:
        return cands[0]        # smallest 8-aligned tile (huge Lk: see kv-tiled TODO)
    return Lq                  # Lq not divisible by 8 -> full-extent block (legal)


# -------------------------------------------------------------------------- wrapper

def scaled_dot_product(query, key, value, mask=None, *, dim_k=None,
                       matmul_dtype="auto", attn_dtype=None, q_tile=None,
                       vmem_limit_bytes=None):
    """Pallas TPU equivalent of ScaledDotProduct.forward. Returns (x, attn).

    matmul_dtype: "auto" (default, bf16 MXU operands for f32/bf16 inputs with f32
                  accumulation and f32 softmax), jnp.float32 for exact matmuls, or an
                  explicit low-precision dtype.
    attn_dtype:   dtype of the returned attention matrix (default query.dtype, i.e.
                  PyTorch parity; bf16 halves attn HBM writeback, a documented
                  precision deviation).
    """
    Lq, D = query.shape
    Lk = key.shape[0]
    Dv = value.shape[-1]
    if dim_k is None:
        dim_k = D
    scale = 1.0 / math.sqrt(float(dim_k))

    # Resolve MXU operand dtype.
    if matmul_dtype is None or matmul_dtype == "auto":
        if query.dtype in (jnp.float32, jnp.bfloat16):
            mm = np.dtype(jnp.bfloat16)
        else:
            mm = None
    else:
        mm = np.dtype(matmul_dtype)
        if mm == np.dtype(jnp.float32):
            mm = None
    # Hoist the K/V low-precision casts out of the kernel: halves K/V VMEM residency
    # and HBM->VMEM DMA, removes a per-grid-step VPU cast.
    if mm is not None:
        if key.dtype != mm:
            key = key.astype(mm)
        if value.dtype != mm:
            value = value.astype(mm)

    x_dtype = query.dtype
    attn_dt = np.dtype(query.dtype if attn_dtype is None else attn_dtype)

    # Normalize mask: broadcast to (Lq, Lk), 1-byte nonzero flags (4x less mask DMA).
    if mask is not None:
        mask = jnp.broadcast_to((jnp.asarray(mask) != 0).astype(jnp.int8), (Lq, Lk))

    vmem_cap = _vmem_capacity_bytes()
    fp_kwargs = dict(
        q_bytes=query.dtype.itemsize,
        kv_bytes=key.dtype.itemsize,
        x_bytes=np.dtype(x_dtype).itemsize,
        attn_bytes=attn_dt.itemsize,
        mask_bytes=(1 if mask is not None else 0),
    )

    if q_tile is None:
        tq = _pick_q_tile(Lq, Lk, D, Dv, budget=int(vmem_cap * 0.7), **fp_kwargs)
    else:
        tq = int(q_tile)
        assert Lq % tq == 0 and (tq % 8 == 0 or tq == Lq), "bad q_tile"
    grid = (Lq // tq,)

    if vmem_limit_bytes is None:
        # Size the scoped VMEM limit from the worst-case (double-buffered K/V) footprint.
        fp2 = _vmem_footprint(tq, Lk, D, Dv, kv_buffers=2, **fp_kwargs)
        vmem_limit_bytes = int(min(vmem_cap - (2 << 20),
                                   max(32 << 20, fp2 * 3 // 2 + (4 << 20))))

    recip_approx = mm is not None
    if mask is None:
        kernel = functools.partial(_sdp_kernel_nomask, scale=scale,
                                   matmul_dtype=mm, recip_approx=recip_approx)
        args = (query, key, value)
    else:
        kernel = functools.partial(_sdp_kernel_mask, scale=scale,
                                   matmul_dtype=mm, recip_approx=recip_approx)
        args = (query, key, value, mask)

    out_shape = (
        jax.ShapeDtypeStruct((Lq, Dv), x_dtype),   # x
        jax.ShapeDtypeStruct((Lq, Lk), attn_dt),   # attn
    )
    out_specs = (
        pl.BlockSpec((tq, Dv), lambda i: (i, 0)),
        pl.BlockSpec((tq, Lk), lambda i: (i, 0)),
    )
    q_spec = pl.BlockSpec((tq, D), lambda i: (i, 0))
    mask_spec = pl.BlockSpec((tq, Lk), lambda i: (i, 0))

    def _call(kv_single_buffer):
        if kv_single_buffer:
            pm = pl.Buffered(1)   # constant index map -> fetched once; no double buffer
            k_spec = pl.BlockSpec((Lk, D), lambda i: (0, 0), pipeline_mode=pm)
            v_spec = pl.BlockSpec((Lk, Dv), lambda i: (0, 0), pipeline_mode=pm)
        else:
            k_spec = pl.BlockSpec((Lk, D), lambda i: (0, 0))
            v_spec = pl.BlockSpec((Lk, Dv), lambda i: (0, 0))
        in_specs = [q_spec, k_spec, v_spec]
        if mask is not None:
            in_specs.append(mask_spec)
        return pl.pallas_call(
            kernel,
            out_shape=out_shape,
            grid=grid,
            in_specs=in_specs,
            out_specs=out_specs,
            compiler_params=pltpu.CompilerParams(
                dimension_semantics=("parallel",),
                vmem_limit_bytes=vmem_limit_bytes,
            ),
        )(*args)

    if hasattr(pl, "Buffered"):
        try:
            return _call(True)
        except Exception:
            pass  # older/different JAX: fall back to default double-buffered K/V
    return _call(False)


# ------------------------------------------------------------------------ reference

def _reference(query, key, value, mask, dim_k):
    s = (query @ key.T) / jnp.sqrt(jnp.float32(dim_k))
    if mask is not None:
        s = jnp.where(mask == 0, jnp.float32(_MASK_FILL), s)
    attn = jax.nn.softmax(s, axis=-1)
    return attn @ value, attn


if __name__ == "__main__":
    # Small but lane-dense shapes: Lq = Lk = 128, dim_k = dim_v = 32.
    Lq, Lk, Dk, Dv = 128, 128, 32, 32
    k0, k1, k2, k3 = jax.random.split(jax.random.PRNGKey(0), 4)
    query = jax.random.normal(k0, (Lq, Dk), dtype=jnp.float32)
    key = jax.random.normal(k1, (Lk, Dk), dtype=jnp.float32)
    value = jax.random.normal(k2, (Lk, Dv), dtype=jnp.float32)
    mask = (jax.random.uniform(k3, (Lq, Lk)) > 0.3).astype(jnp.int32)

    xr_nm, ar_nm = _reference(query, key, value, None, Dk)
    xr_m, ar_m = _reference(query, key, value, mask, Dk)

    # 1) Exact f32 matmuls, no mask (auto-picked tq=64 -> 2 grid steps).
    x0, a0 = scaled_dot_product(query, key, value, dim_k=Dk,
                                matmul_dtype=jnp.float32)
    jax.block_until_ready((x0, a0))
    assert jnp.allclose(x0, xr_nm, atol=1e-4, rtol=1e-4), "f32 no-mask x mismatch"
    assert jnp.allclose(a0, ar_nm, atol=2e-5, rtol=1e-4), "f32 no-mask attn mismatch"

    # 2) Default path (bf16 MXU operands, f32 softmax), masked, forced 4-step grid.
    x1, a1 = scaled_dot_product(query, key, value, mask=mask, dim_k=Dk, q_tile=32)
    jax.block_until_ready((x1, a1))
    assert jnp.allclose(x1, xr_m, atol=2e-1, rtol=1e-1), "bf16 masked x mismatch"
    assert jnp.allclose(a1, ar_m, atol=3e-2, rtol=1e-1), "bf16 masked attn mismatch"

    # 3) bf16 attn writeback (halves the dominant Lq*Lk HBM write; documented deviation).
    x2, a2 = scaled_dot_product(query, key, value, mask=mask, dim_k=Dk,
                                attn_dtype=jnp.bfloat16)
    jax.block_until_ready((x2, a2))
    assert a2.dtype == jnp.bfloat16
    assert jnp.allclose(x2, xr_m, atol=2e-1, rtol=1e-1), "bf16-attn x mismatch"
    assert jnp.allclose(a2.astype(jnp.float32), ar_m, atol=4e-2, rtol=1e-1), \
        "bf16-attn attn mismatch"

    # 4) Broadcastable mask (1, Lk), as PyTorch masked_fill broadcasting allows.
    mask_row = mask[:1]
    x3, a3 = scaled_dot_product(query, key, value, mask=mask_row, dim_k=Dk)
    jax.block_until_ready((x3, a3))
    xr_b, ar_b = _reference(query, key, value, mask_row, Dk)
    assert jnp.allclose(x3, xr_b, atol=2e-1, rtol=1e-1), "broadcast-mask x mismatch"
    assert jnp.allclose(a3, ar_b, atol=3e-2, rtol=1e-1), "broadcast-mask attn mismatch"

    print("KERNEL_OK")
</pallas_src>

<mosaic_0001>
module attributes {stable_mosaic.version = 11 : i64} {
  func.func @_sdp_kernel_nomask(%arg0: i32, %arg1: memref<64x32xf32, #tpu.memory_space<vmem>>, %arg2: memref<128x32xf32, #tpu.memory_space<vmem>>, %arg3: memref<128x32xf32, #tpu.memory_space<vmem>>, %arg4: memref<64x32xf32, #tpu.memory_space<vmem>>, %arg5: memref<64x128xf32, #tpu.memory_space<vmem>>) attributes {dimension_semantics = [#tpu.dimension_semantics<parallel>], iteration_bounds = array<i64: 2>, scalar_prefetch = 0 : i64, scratch_operands = 0 : i64, tpu.core_type = #tpu.core_type<tc>, window_params = [{transform_indices = @transform_0, window_bounds = array<i64: 64, 32>}, {pipeline_mode = #tpu.pipeline_mode<synchronous>, transform_indices = @transform_1, window_bounds = array<i64: 128, 32>}, {pipeline_mode = #tpu.pipeline_mode<synchronous>, transform_indices = @transform_2, window_bounds = array<i64: 128, 32>}, {transform_indices = @transform_3, window_bounds = array<i64: 64, 32>}, {transform_indices = @transform_4, window_bounds = array<i64: 64, 128>}]} {
    %c0 = arith.constant 0 : index
    %c0_0 = arith.constant 0 : index
    %0 = vector.load %arg1[%c0, %c0_0] : memref<64x32xf32, #tpu.memory_space<vmem>>, vector<64x32xf32>
    %c0_1 = arith.constant 0 : index
    %c0_2 = arith.constant 0 : index
    %1 = vector.load %arg2[%c0_1, %c0_2] : memref<128x32xf32, #tpu.memory_space<vmem>>, vector<128x32xf32>
    %c0_3 = arith.constant 0 : index
    %c0_4 = arith.constant 0 : index
    %2 = vector.load %arg3[%c0_3, %c0_4] : memref<128x32xf32, #tpu.memory_space<vmem>>, vector<128x32xf32>
    %cst = arith.constant 0.176776692 : f32
    %3 = vector.broadcast %cst : f32 to vector<64x32xf32>
    %4 = arith.mulf %0, %3 : vector<64x32xf32>
    %cst_5 = arith.constant dense<0.000000e+00> : vector<64x128xf32>
    %5 = tpu.matmul %4, %1, %cst_5 {dimension_numbers = #tpu.dot_dimension_numbers<[1], [1], [0], [0], [0, 0, 1, 0], [], []>} : vector<64x32xf32>, vector<128x32xf32>, vector<64x128xf32> -> vector<64x128xf32>
    %cst_6 = arith.constant dense<0xFF800000> : vector<64xf32>
    %6 = vector.multi_reduction <maximumf>, %5, %cst_6 [1] : vector<64x128xf32> to vector<64xf32>
    %7 = vector.shape_cast %6 : vector<64xf32> to vector<64x1xf32>
    %8 = vector.broadcast %7 : vector<64x1xf32> to vector<64x128xf32>
    %9 = arith.subf %5, %8 : vector<64x128xf32>
    %10 = math.exp %9 : vector<64x128xf32>
    %cst_7 = arith.constant dense<0.000000e+00> : vector<64xf32>
    %11 = vector.multi_reduction <add>, %10, %cst_7 [1] : vector<64x128xf32> to vector<64xf32>
    %12 = vector.shape_cast %11 : vector<64xf32> to vector<64x1xf32>
    %13 = tpu.reciprocal %12 : vector<64x1xf32> -> vector<64x1xf32>
    %14 = vector.broadcast %13 : vector<64x1xf32> to vector<64x128xf32>
    %15 = arith.mulf %10, %14 : vector<64x128xf32>
    %c0_8 = arith.constant 0 : index
    %c0_9 = arith.constant 0 : index
    %16 = vector.load %arg5[%c0_8, %c0_9] : memref<64x128xf32, #tpu.memory_space<vmem>>, vector<64x128xf32>
    tpu.vector_store %arg5[%c0_8, %c0_9], %15 {strides = array<i32>} : memref<64x128xf32, #tpu.memory_space<vmem>>, vector<64x128xf32>,
    %cst_10 = arith.constant dense<0.000000e+00> : vector<64x32xf32>
    %17 = tpu.matmul %15, %2, %cst_10 {dimension_numbers = #tpu.dot_dimension_numbers<[1], [0], [0], [1], [0, 0, 1, 1], [], []>} : vector<64x128xf32>, vector<128x32xf32>, vector<64x32xf32> -> vector<64x32xf32>
    %c0_11 = arith.constant 0 : index
    %c0_12 = arith.constant 0 : index
    %18 = vector.load %arg4[%c0_11, %c0_12] : memref<64x32xf32, #tpu.memory_space<vmem>>, vector<64x32xf32>
    tpu.vector_store %arg4[%c0_11, %c0_12], %17 {strides = array<i32>} : memref<64x32xf32, #tpu.memory_space<vmem>>, vector<64x32xf32>,
    return
  }
  func.func @transform_0(%arg0: i32) -> (i32, i32) {
    %c0_i32 = arith.constant 0 : i32
    %c0_i32_0 = arith.constant 0 : i32
    return %arg0, %c0_i32 : i32, i32
  }
  func.func @transform_1(%arg0: i32) -> (i32, i32) {
    %c0_i32 = arith.constant 0 : i32
    %c0_i32_0 = arith.constant 0 : i32
    %c0_i32_1 = arith.constant 0 : i32
    return %c0_i32, %c0_i32_0 : i32, i32
  }
  func.func @transform_2(%arg0: i32) -> (i32, i32) {
    %c0_i32 = arith.constant 0 : i32
    %c0_i32_0 = arith.constant 0 : i32
    %c0_i32_1 = arith.constant 0 : i32
    return %c0_i32, %c0_i32_0 : i32, i32
  }
  func.func @transform_3(%arg0: i32) -> (i32, i32) {
    %c0_i32 = arith.constant 0 : i32
    %c0_i32_0 = arith.constant 0 : i32
    return %arg0, %c0_i32 : i32, i32
  }
  func.func @transform_4(%arg0: i32) -> (i32, i32) {
    %c0_i32 = arith.constant 0 : i32
    %c0_i32_0 = arith.constant 0 : i32
    return %arg0, %c0_i32 : i32, i32
  }
}

module attributes {stable_mosaic.version = 11 : i64} {
  func.func @_sdp_kernel_nomask(%arg0: i32, %arg1: memref<64x32xf32, #tpu.memory_space<vmem>>, %arg2: memref<128x32xf32, #tpu.memory_space<vmem>>, %arg3: memref<128x32xf32, #tpu.memory_space<vmem>>, %arg4: memref<64x32xf32, #tpu.memory_space<vmem>>, %arg5: memref<64x128xf32, #tpu.memory_space<vmem>>) attributes {dimension_semantics = [#tpu.dimension_semantics<parallel>], iteration_bounds = array<i64: 2>, scalar_prefetch = 0 : i64, scratch_operands = 0 : i64, tpu.core_type = #tpu.core_type<tc>, window_params = [{transform_indices = @transform_0, window_bounds = array<i64: 64, 32>}, {pipeline_mode = #tpu.pipeline_mode<synchronous>, transform_indices = @transform_1, window_bounds = array<i64: 128, 32>}, {pipeline_mode = #tpu.pipeline_mode<synchronous>, transform_indices = @transform_2, window_bounds = array<i64: 128, 32>}, {transform_indices = @transform_3, window_bounds = array<i64: 64, 32>}, {transform_indices = @transform_4, window_bounds = array<i64: 64, 128>}]} {
    %c0 = arith.constant 0 : index
    %c0_0 = arith.constant 0 : index
    %0 = vector.load %arg1[%c0, %c0_0] : memref<64x32xf32, #tpu.memory_space<vmem>>, vector<64x32xf32>
    %c0_1 = arith.constant 0 : index
    %c0_2 = arith.constant 0 : index
    %1 = vector.load %arg2[%c0_1, %c0_2] : memref<128x32xf32, #tpu.memory_space<vmem>>, vector<128x32xf32>
    %c0_3 = arith.constant 0 : index
    %c0_4 = arith.constant 0 : index
    %2 = vector.load %arg3[%c0_3, %c0_4] : memref<128x32xf32, #tpu.memory_space<vmem>>, vector<128x32xf32>
    %cst = arith.constant 0.176776692 : f32
    %3 = vector.broadcast %cst : f32 to vector<64x32xf32>
    %4 = arith.mulf %0, %3 : vector<64x32xf32>
    %cst_5 = arith.constant dense<0.000000e+00> : vector<64x128xf32>
    %5 = tpu.matmul %4, %1, %cst_5 {dimension_numbers = #tpu.dot_dimension_numbers<[1], [1], [0], [0], [0, 0, 1, 0], [], []>} : vector<64x32xf32>, vector<128x32xf32>, vector<64x128xf32> -> vector<64x128xf32>
    %cst_6 = arith.constant dense<0xFF800000> : vector<64xf32>
    %6 = vector.multi_reduction <maximumf>, %5, %cst_6 [1] : vector<64x128xf32> to vector<64xf32>
    %7 = vector.shape_cast %6 : vector<64xf32> to vector<64x1xf32>
    %8 = vector.broadcast %7 : vector<64x1xf32> to vector<64x128xf32>
    %9 = arith.subf %5, %8 : vector<64x128xf32>
    %10 = math.exp %9 : vector<64x128xf32>
    %cst_7 = arith.constant dense<0.000000e+00> : vector<64xf32>
    %11 = vector.multi_reduction <add>, %10, %cst_7 [1] : vector<64x128xf32> to vector<64xf32>
    %12 = vector.shape_cast %11 : vector<64xf32> to vector<64x1xf32>
    %13 = tpu.reciprocal %12 : vector<64x1xf32> -> vector<64x1xf32>
    %14 = vector.broadcast %13 : vector<64x1xf32> to vector<64x128xf32>
    %15 = arith.mulf %10, %14 : vector<64x128xf32>
    %c0_8 = arith.constant 0 : index
    %c0_9 = arith.constant 0 : index
    %16 = vector.load %arg5[%c0_8, %c0_9] : memref<64x128xf32, #tpu.memory_space<vmem>>, vector<64x128xf32>
    tpu.vector_store %arg5[%c0_8, %c0_9], %15 {strides = array<i32>} : memref<64x128xf32, #tpu.memory_space<vmem>>, vector<64x128xf32>,
    %cst_10 = arith.constant dense<0.000000e+00> : vector<64x32xf32>
    %17 = tpu.matmul %15, %2, %cst_10 {dimension_numbers = #tpu.dot_dimension_numbers<[1], [0], [0], [1], [0, 0, 1, 1], [], []>} : vector<64x128xf32>, vector<128x32xf32>, vector<64x32xf32> -> vector<64x32xf32>
    %c0_11 = arith.constant 0 : index
    %c0_12 = arith.constant 0 : index
    %18 = vector.load %arg4[%c0_11, %c0_12] : memref<64x32xf32, #tpu.memory_space<vmem>>, vector<64x32xf32>
    tpu.vector_store %arg4[%c0_11, %c0_12], %17 {strides = array<i32>} : memref<64x32xf32, #tpu.memory_space<vmem>>, vector<64x32xf32>,
    return
  }
  func.func @transform_0(%arg0: i32) -> (i32, i32) {
    %c0_i32 = arith.constant 0 : i32
    %c0_i32_0 = arith.constant 0 : i32
    return %arg0, %c0_i32 : i32, i32
  }
  func.func @transform_1(%arg0: i32) -> (i32, i32) {
    %c0_i32 = arith.constant 0 : i32
    %c0_i32_0 = arith.constant 0 : i32
    %c0_i32_1 = arith.constant 0 : i32
    return %c0_i32, %c0_i32_0 : i32, i32
  }
  func.func @transform_2(%arg0: i32) -> (i32, i32) {
    %c0_i32 = arith.constant 0 : i32
    %c0_i32_0 = arith.constant 0 : i32
    %c0_i32_1 = arith.constant 0 : i32
    return %c0_i32, %c0_i32_0 : i32, i32
  }
  func.func @transform_3(%arg0: i32) -> (i32, i32) {
    %c0_i32 = arith.constant 0 : i32
    %c0_i32_0 = arith.constant 0 : i32
    return %arg0, %c0_i32 : i32, i32
  }
  func.func @transform_4(%arg0: i32) -> (i32, i32) {
    %c0_i32 = arith.constant 0 : i32
    %c0_i32_0 = arith.constant 0 : i32
    return %arg0, %c0_i32 : i32, i32
  }
}

</mosaic_0001>

<bundles_post_ra>
// kernel: tpu_custom_call.1
= control target key start
LH: loop header
LB: loop body
LE: loop exit
PB: predicated region body
PF: predicated region fallthrough
CT: control target
= control target key end

     0   :  { %10 = vsyncpa [#allocation3], 0  ;;  %s1469_s0 = inlined_call_operand.vmem [shape: f32[128,32], index: 0, kind: input, shape index: {}]   ;;  %s1470_s1 = inlined_call_operand.vmem [shape: f32[128,32], index: 1, kind: input, shape index: {}]   ;;  %s1471_s2 = inlined_call_operand.vmem [shape: f32[128,32], index: 2, kind: input, shape index: {}]   ;;  %s1472_s3 = inlined_call_operand.vmem [shape: f32[128,32], index: 3, kind: output, shape index: {0}]   ;;  %s1473_s4 = inlined_call_operand.hbm [shape: f32[128,128], index: 4, kind: output, shape index: {1}]  }
   0x1   :  { %12 = vsyncpa [#allocation3 + $0x1], 0  ;;  %s1162_s15 = smov 0   ;;  %s1164_s16 = smov 0  }
   0x2   :  { %s1166_s17 = smov 0   ;;  %s1168_s18 = smov 0  }
   0x3 LB: > { %s1183_s19 = sadd.s32 4294967295, %s1132_s18   ;;  %s742_s20 = sadd.s32 4294967294, %s1132_s18   ;;  %s1132_s18 = sphi %s1168_s18, %s1481_s18   ;;  %s1128_s17 = sphi %s1166_s17, %s1480_s17   ;;  %s1124_s16 = sphi %s1164_s16, %s1479_s16   ;;  %s1120_s15 = sphi %s1162_s15, %s1478_s15  }
   0x4   : > { %s1187_s21 = sadd.s32 1, %s1132_s18   ;;  %s119_s22 = sadd.s32 1, %s1128_s17 }
   0x5   : > { %s116_s23 = ssub.s32 %s1132_s18, %s1187_s21  ;;  %p129_p0 = scmp.ne.s32.totalorder %s1128_s17, %s1124_s16 }
   0x6   : > { %p117_p1 = scmp.eq.s32.totalorder %s116_s23, 0  ;;  %p130_p2 = scmp.eq.s32.totalorder %s1183_s19, 1 }
   0x7   : > { %p135_p3 = scmp.ne.s32.totalorder %s1124_s16, %s1120_s15  ;;  %p136_p4 = scmp.eq.s32.totalorder %s742_s20, 1 }
   0x8   : > { %s1198_s24 = scalar_select %p117_p1, %s1128_s17, %s119_s22  }
   0x9   : > { %p1200_p5 = por %p130_p2, %p129_p0  ;;  %p1204_p6 = por %p136_p4, %p135_p3 }
   0xa   : > { %p745_p7 = scmp.ge.s32.totalorder %s1132_s18, 1  ;;  %p169_p8 = scmp.lt.s32.totalorder %s1132_s18, 3 }
   0xc   : > { %p170_p9 = pnand %p745_p7, %p169_p8 }
   0xd   : > { %v221_v0 = vld [vmem:[%s1470_s1] sm:$0xff] (!%p170_p9)  ;;  %v222_v1 = vld [vmem:[%s1470_s1 + $0x8] sm:$0xff] (!%p170_p9)  ;;  %vm261_vm0 = vcmask (!%p170_p9), 261120   ;;  %v223_v2 = vld [vmem:[%s1470_s1 + $0x10] sm:$0xff] (!%p170_p9)  ;;  %s747_s7 = sshll.u32 (!%p170_p9), %s1183_s19, 3  ;;  %s197_s9 = sand.u32 (!%p170_p9), 1, %s1124_s16  }
   0xe   : > { %173 = sbr.rel (%p170_p9) target bundleno = 835 (0x343), region = 32  ;;  %v917_v3 = vpack.c.bf16 (!%p170_p9), %v222_v1, %v221_v0  ;;  %vm1222_vm1 = vmpackc.low (!%p170_p9), %vm261_vm0, %vm261_vm0  ;;  %v224_v5 = vld [vmem:[%s1470_s1 + $0x18] sm:$0xff] (!%p170_p9)  ;;  %p201_p10 = scmp.lt.s32.totalorder (!%p170_p9), %s747_s7, 15  ;;  %v225_v7 = vld [vmem:[%s1470_s1 + $0x20] sm:$0xff] (!%p170_p9) }
   0xf   : > { %v923_v6 = vpack.c.bf16 (!%p170_p9), %v224_v5, %v223_v2  ;;  %v226_v8 = vld [vmem:[%s1470_s1 + $0x28] sm:$0xff] (!%p170_p9)  ;;  %v227_v12 = vld [vmem:[%s1470_s1 + $0x30] sm:$0xff] (!%p170_p9)  ;;  %v228_v13 = vld [vmem:[%s1470_s1 + $0x38] sm:$0xff] (!%p170_p9)  ;;  %s746_s11 = sshll.u32 (!%p170_p9), %s197_s9, 6  ;;  %s780_s13 = sshll.u32 (!%p170_p9), %s1183_s19, 10 }
  0x10   : > { %919 = vmatprep.subr.msk.bf16.mxu0 (!%p170_p9), %vm1222_vm1, %v917_v3  ;;  %v929_v11 = vpack.c.bf16 (!%p170_p9), %v226_v8, %v225_v7  ;;  %v935_v14 = vpack.c.bf16 (!%p170_p9), %v228_v13, %v227_v12  ;;  %v229_v15 = vld [vmem:[%s1470_s1 + $0x40] sm:$0xff] (!%p170_p9)  ;;  %v230_v16 = vld [vmem:[%s1470_s1 + $0x48] sm:$0xff] (!%p170_p9)  ;;  %v231_v18 = vld [vmem:[%s1470_s1 + $0x50] sm:$0xff] (!%p170_p9)  ;;  %s1389_s12 = scalar_lea.vmem (!%p170_p9), [#allocation2], %s746_s11  ;;  %s1409_s27 = scalar_lea.hbm (!%p170_p9), %s1473_s4, %s780_s13 }
  0x11   : > { %922 = vmatpush3.bf16.xpose.msk.msra.mxu0 (!%p170_p9), %vm1222_vm1, %v917_v3  ;;  %v941_v17 = vpack.c.bf16 (!%p170_p9), %v230_v16, %v229_v15  ;;  %v232_v19 = vld [vmem:[%s1470_s1 + $0x58] sm:$0xff] (!%p170_p9)  ;;  %v233_v21 = vld [vmem:[%s1470_s1 + $0x60] sm:$0xff] (!%p170_p9)  ;;  %v234_v22 = vld [vmem:[%s1470_s1 + $0x68] sm:$0xff] (!%p170_p9)  ;;  %s655_s14 = sshll.u32 (!%p170_p9), %s1389_s12, 4  ;;  %s1415_s28 = scalar_lea.sflag (!%p170_p9), [#allocation3], %s197_s9  ;;  %s1411_s14 = int_to_ptr.vmem [resolvable:$true] %s655_s14 }
  0x12   : > { %925 = vmatprep.subr.msk.bf16.mxu0 (!%p170_p9), %vm1222_vm1, %v923_v6  ;;  %v947_v20 = vpack.c.bf16 (!%p170_p9), %v232_v19, %v231_v18  ;;  %v953_v23 = vpack.c.bf16 (!%p170_p9), %v234_v22, %v233_v21  ;;  %v235_v24 = vld [vmem:[%s1470_s1 + $0x70] sm:$0xff] (!%p170_p9)  ;;  %v236_v25 = vld [vmem:[%s1470_s1 + $0x78] sm:$0xff] (!%p170_p9)  ;;  %v237_v49 = vld [vmem:[%s1471_s2] sm:$0xff] (!%p170_p9)  ;;  %s1070_s29 = scalar_lea.vmem (!%p170_p9), %s1411_s14, 1024  ;;  %s1134_s19 = smov (!%p170_p9), [#allocation2]  }
  0x13   : > { %v959_v26 = vpack.c.bf16 (!%p170_p9), %v236_v25, %v235_v24  ;;  %v238_v50 = vld [vmem:[%s1471_s2 + $0x8] sm:$0xff] (!%p170_p9)  ;;  %v239_v51 = vld [vmem:[%s1471_s2 + $0x10] sm:$0xff] (!%p170_p9)  ;;  %v240_v53 = vld [vmem:[%s1471_s2 + $0x18] sm:$0xff] (!%p170_p9)  ;;  %p1071_p11 = scmp.ne.s32.totalorder (!%p170_p9), %s1411_s14, %s1070_s29  ;;  %s1074_s30 = sshll.u32 (!%p170_p9), %s1134_s19, 4  ;;  %s1075_s30 = int_to_ptr.vmem [resolvable:$false] %s1074_s30 }
  0x14   : > { %v965_v52 = vpack.c.bf16 (!%p170_p9), %v238_v50, %v237_v49  ;;  %v969_v54 = vpack.c.bf16 (!%p170_p9), %v240_v53, %v239_v51  ;;  %v241_v55 = vld [vmem:[%s1471_s2 + $0x20] sm:$0xff] (!%p170_p9)  ;;  %v242_v56 = vld [vmem:[%s1471_s2 + $0x28] sm:$0xff] (!%p170_p9)  ;;  %v243_v58 = vld [vmem:[%s1471_s2 + $0x30] sm:$0xff] (!%p170_p9)  ;;  %s1076_s5 = scalar_lea.vmem (!%p170_p9), %s1075_s30, 2048  ;;  %p1077_p0 = scmp.lt.s32.totalorder (!%p170_p9), %s1411_s14, %s1075_s30 }
  0x15   : > { %s1483_s7 = smov (!%p201_p10, %s747_s7), 15  ;;  %v973_v57 = vpack.c.bf16 %v242_v56, %v241_v55  ;;  %v244_v59 = vld [vmem:[%s1471_s2 + $0x38] sm:$0xff]  ;;  %p1072_p12 = pnand %p1071_p11, %p1200_p5 }
  0x16   : > { %s748_s10 = sshll.u32 %s1483_s7, 3  ;;  %966 = vmatprep.subr.bf16.mxu1 %v965_v52  ;;  %v977_v60 = vpack.c.bf16 %v244_v59, %v243_v58  ;;  %p1078_p1 = scmp.lt.s32.totalorder %s1076_s5, %s1070_s29 }
  0x17   : > { %s1249_s23 = scalar_lea.vmem %s1469_s0, %s748_s10  ;;  %968 = vmatpush3.bf16.msra.mxu1 %v965_v52  ;;  %p1073_p13 = pneg %p1072_p12 }
  0x18   : > { %v213_v9 = vld [vmem:[%s1249_s23] sm:$0xff]  ;;  %v214_v27 = vld [vmem:[%s1249_s23 + $0x8] sm:$0xff]  ;;  %v215_v28 = vld [vmem:[%s1249_s23 + $0x10] sm:$0xff]  ;;  %970 = vmatprep.subr.bf16.mxu1 %v969_v54  ;;  %p1079_p2 = por %p1078_p1, %p1077_p0 }
  0x19   : > { %v253_v10 = vmul.f32 0.17677669, %v213_v9  ;;  %928 = vmatpush3.bf16.xpose.msk.msra.mxu0 %vm1222_vm1, %v923_v6  ;;  %v254_v29 = vmul.f32 0.17677669, %v214_v27  ;;  %v255_v30 = vmul.f32 0.17677669, %v215_v28 }
  0x1a   : > { %931 = vmatprep.subr.msk.bf16.mxu0 %vm1222_vm1, %v929_v11  ;;  %v216_v31 = vld [vmem:[%s1249_s23 + $0x18] sm:$0xff]  ;;  %v217_v32 = vld [vmem:[%s1249_s23 + $0x20] sm:$0xff]  ;;  %v218_v35 = vld [vmem:[%s1249_s23 + $0x28] sm:$0xff]  ;;  %p1080_p3 = pnand %p1079_p2, %p1073_p13 }
  0x1b   : > { %861 = vmatprep.mubr.msk.f32.mxu0 %vm261_vm0, %v253_v10  ;;  %v256_v33 = vmul.f32 0.17677669, %v216_v31  ;;  %v257_v34 = vmul.f32 0.17677669, %v217_v32  ;;  %v219_v36 = vld [vmem:[%s1249_s23 + $0x30] sm:$0xff]  ;;  %v220_v39 = vld [vmem:[%s1249_s23 + $0x38] sm:$0xff]  ;;  %972 = vmatpush3.bf16.msra.mxu1 %v969_v54 }
  0x1c   : > { %v258_v37 = vmul.f32 0.17677669, %v218_v35  ;;  %v259_v38 = vmul.f32 0.17677669, %v219_v36  ;;  %v260_v40 = vmul.f32 0.17677669, %v220_v39  ;;  %974 = vmatprep.subr.bf16.mxu1 %v973_v57 }
  0x1d   : > { %v245_v28 = vld [vmem:[%s1471_s2 + $0x40] sm:$0xff]  ;;  %v247_v32 = vld [vmem:[%s1471_s2 + $0x50] sm:$0xff]  ;;  %v250_v36 = vld [vmem:[%s1471_s2 + $0x68] sm:$0xff] }
  0x1e   : > { %v249_v35 = vld [vmem:[%s1471_s2 + $0x60] sm:$0xff]  ;;  %v252_v39 = vld [vmem:[%s1471_s2 + $0x78] sm:$0xff] }
  0x1f   : > { %976 = vmatpush3.bf16.msra.mxu1 %v973_v57 }
  0x20   : > { %978 = vmatprep.subr.bf16.mxu1 %v977_v60 }
  0x21   : > { %934 = vmatpush3.bf16.xpose.msk.msra.mxu0 %vm1222_vm1, %v929_v11 }
  0x22   : > { %937 = vmatprep.subr.msk.bf16.mxu0 %vm1222_vm1, %v935_v14 }
  0x23   : > { %980 = vmatpush3.bf16.msra.mxu1 %v977_v60 }
  0x29   : > { %940 = vmatpush3.bf16.xpose.msk.msra.mxu0 %vm1222_vm1, %v935_v14 }
  0x2a   : > { %943 = vmatprep.subr.msk.bf16.mxu0 %vm1222_vm1, %v941_v17 }
  0x31   : > { %946 = vmatpush3.bf16.xpose.msk.msra.mxu0 %vm1222_vm1, %v941_v17 }
  0x32   : > { %949 = vmatprep.subr.msk.bf16.mxu0 %vm1222_vm1, %v947_v20 }
  0x39   : > { %952 = vmatpush3.bf16.xpose.msk.msra.mxu0 %vm1222_vm1, %v947_v20 }
  0x3a   : > { %955 = vmatprep.subr.msk.bf16.mxu0 %vm1222_vm1, %v953_v23 }
  0x41   : > { %958 = vmatpush3.bf16.xpose.msk.msra.mxu0 %vm1222_vm1, %v953_v23 }
  0x42   : > { %961 = vmatprep.subr.msk.bf16.mxu0 %vm1222_vm1, %v959_v26 }
  0x49   : > { %964 = vmatpush3.bf16.xpose.msk.msra.mxu0 %vm1222_vm1, %v959_v26 }
  0x50   : > { %862 = vmatmul.mubr.msk.f32.vlgmr.msra.gmra.mrb[0].mxu0 %vm261_vm0, %v254_v29  ;;  %v246_v29 = vld [vmem:[%s1471_s2 + $0x48] sm:$0xff] }
  0x51   : > { %864 = vmatprep.mubr.msk.f32.mxu0 %vm261_vm0, %v255_v30  ;;  %v981_v30 = vpack.c.bf16 %v246_v29, %v245_v28 }
  0x53   : > { %982 = vmatprep.subr.bf16.mxu1 %v981_v30 }
  0x54   : > { %865 = vmatmul.mubr.msk.f32.gmra.mrb[2].mxu0 %vm261_vm0, %v256_v33  ;;  %984 = vmatpush3.bf16.msra.mxu1 %v981_v30  ;;  %v248_v33 = vld [vmem:[%s1471_s2 + $0x58] sm:$0xff] }
  0x55   : > { %867 = vmatprep.mubr.msk.f32.mxu0 %vm261_vm0, %v257_v34  ;;  %v985_v34 = vpack.c.bf16 %v248_v33, %v247_v32 }
  0x57   : > { %986 = vmatprep.subr.bf16.mxu1 %v985_v34 }
  0x58   : > { %868 = vmatmul.mubr.msk.f32.gmra.mrb[4].mxu0 %vm261_vm0, %v258_v37  ;;  %988 = vmatpush3.bf16.msra.mxu1 %v985_v34  ;;  %v989_v37 = vpack.c.bf16 %v250_v36, %v249_v35 }
  0x59   : > { %870 = vmatprep.mubr.msk.f32.mxu0 %vm261_vm0, %v259_v38  ;;  %v251_v38 = vld [vmem:[%s1471_s2 + $0x70] sm:$0xff] }
  0x5a   : > { %990 = vmatprep.subr.bf16.mxu1 %v989_v37 }
  0x5c   : > { %871 = vmatmul.mubr.msk.f32.gmra.mrb[6].mxu0 %vm261_vm0, %v260_v40  ;;  %992 = vmatpush3.bf16.msra.mxu1 %v989_v37  ;;  %v993_v40 = vpack.c.bf16 %v252_v39, %v251_v38 }
  0x5e   : > { %994 = vmatprep.subr.bf16.mxu1 %v993_v40 }
  0x60   : > { %996 = vmatpush3.bf16.msra.mxu1 %v993_v40 }
 0x123   : > { %v863_v41 = vpop.f32.mrb[0].mxu0 }
 0x124   : > { %v400_v42 = vpop.f32.mrb[1].mxu0 }
 0x125   : > { %439 = vmax.xlane.f32.xlu0 %v400_v42 }
 0x127   : > { %v866_v43 = vpop.f32.mrb[2].mxu0 }
 0x128   : > { %v410_v44 = vpop.f32.mrb[3].mxu0 }
 0x129   : > { %441 = vmax.xlane.f32.xlu0 %v863_v41  ;;  %443 = vmax.xlane.f32.xlu1 %v410_v44 }
 0x12b   : > { %v869_v45 = vpop.f32.mrb[4].mxu0 }
 0x12c   : > { %v420_v46 = vpop.f32.mrb[5].mxu0 }
 0x12d   : > { %445 = vmax.xlane.f32.xlu1 %v866_v43  ;;  %447 = vmax.xlane.f32.xlu0 %v420_v46 }
 0x12f   : > { %v872_v47 = vpop.f32.mrb[6].mxu0 }
 0x130   : > { %v430_v48 = vpop.f32.mrb[7].mxu0 }
 0x131   : > { %449 = vmax.xlane.f32.xlu1 %v869_v45  ;;  %451 = vmax.xlane.f32.xlu0 %v430_v48 }
 0x135   : > { %453 = vmax.xlane.f32.xlu1 %v872_v47 }
 0x1b2   : > { %v440_v61 = vpop.xlane.xlu0 %439 }
 0x1b3   : > { %v455_v62 = vsub.f32 %v400_v42, %v440_v61 }
 0x1b5   : > { %v463_v63 = vmul.f32 1.442695, %v455_v62 }
 0x1b6   : > { %v442_v0 = vpop.xlane.xlu0 %441  ;;  %v444_v1 = vpop.xlane.xlu1 %443 }
 0x1b7   : > { %1038 = vpow2.f32 %v463_v63  ;;  %v456_v2 = vsub.f32 %v863_v41, %v442_v0  ;;  %v457_v3 = vsub.f32 %v410_v44, %v444_v1 }
 0x1b9   : > { %v465_v4 = vmul.f32 1.442695, %v456_v2  ;;  %v467_v5 = vmul.f32 1.442695, %v457_v3 }
 0x1ba   : > { %v446_v6 = vpop.xlane.xlu1 %445  ;;  %v448_v7 = vpop.xlane.xlu0 %447 }
 0x1bb   : > { %1040 = vpow2.f32 %v465_v4  ;;  %v458_v8 = vsub.f32 %v866_v43, %v446_v6  ;;  %v459_v9 = vsub.f32 %v420_v46, %v448_v7 }
 0x1bc   : > { %1042 = vpow2.f32 %v467_v5 }
 0x1bd   : > { %v469_v10 = vmul.f32 1.442695, %v458_v8  ;;  %v471_v11 = vmul.f32 1.442695, %v459_v9 }
 0x1be   : > { %v450_v12 = vpop.xlane.xlu1 %449  ;;  %v452_v13 = vpop.xlane.xlu0 %451 }
 0x1bf   : > { %1044 = vpow2.f32 %v469_v10  ;;  %v460_v14 = vsub.f32 %v869_v45, %v450_v12  ;;  %v461_v15 = vsub.f32 %v430_v48, %v452_v13 }
 0x1c0   : > { %1046 = vpow2.f32 %v471_v11 }
 0x1c1   : > { %v1039_v16 = vpop.eup %1038  ;;  %v473_v17 = vmul.f32 1.442695, %v460_v14  ;;  %v475_v18 = vmul.f32 1.442695, %v461_v15 }
 0x1c2   : > { %v454_v19 = vpop.xlane.xlu1 %453  ;;  %479 = vadd.xlane.f32.xlu0 %v1039_v16 }
 0x1c3   : > { %1048 = vpow2.f32 %v473_v17  ;;  %v462_v20 = vsub.f32 %v872_v47, %v454_v19 }
 0x1c4   : > { %1050 = vpow2.f32 %v475_v18 }
 0x1c5   : > { %v1041_v21 = vpop.eup %1040  ;;  %v477_v22 = vmul.f32 1.442695, %v462_v20 }
 0x1c6   : > { %v1043_v23 = vpop.eup %1042  ;;  %481 = vadd.xlane.f32.xlu1 %v1041_v21 }
 0x1c7   : > { %1052 = vpow2.f32 %v477_v22  ;;  %483 = vadd.xlane.f32.xlu0 %v1043_v23 }
 0x1c9   : > { %v1347_v24 = vpop.eup %1044 }
 0x1ca   : > { %v1349_v25 = vpop.eup %1046  ;;  %485 = vadd.xlane.f32.xlu1 %v1347_v24 }
 0x1cb   : > { %487 = vadd.xlane.f32.xlu0 %v1349_v25 }
 0x1cd   : > { %v1353_v26 = vpop.eup %1048 }
 0x1ce   : > { %v1355_v27 = vpop.eup %1050  ;;  %489 = vadd.xlane.f32.xlu1 %v1353_v26 }
 0x1cf   : > { %491 = vadd.xlane.f32.xlu0 %v1355_v27 }
 0x1d1   : > { %v1365_v31 = vpop.eup %1052 }
 0x1d2   : > { %493 = vadd.xlane.f32.xlu1 %v1365_v31 }
 0x24f   : > { %v480_v41 = vpop.xlane.xlu0 %479 }
 0x250   : > { %1054 = vrcp.f32 %v480_v41 }
 0x253   : > { %v482_v42 = vpop.xlane.xlu1 %481 }
 0x254   : > { %1056 = vrcp.f32 %v482_v42  ;;  %v484_v43 = vpop.xlane.xlu0 %483 }
 0x255   : > { %1058 = vrcp.f32 %v484_v43 }
 0x257   : > { %v486_v44 = vpop.xlane.xlu1 %485 }
 0x258   : > { %1060 = vrcp.f32 %v486_v44  ;;  %v488_v45 = vpop.xlane.xlu0 %487 }
 0x259   : > { %1062 = vrcp.f32 %v488_v45 }
 0x25a   : > { %v1055_v46 = vpop.eup %1054 }
 0x25b   : > { %v490_v47 = vpop.xlane.xlu1 %489  ;;  %v503_v48 = vmul.f32 %v1055_v46, %v1039_v16 }
 0x25c   : > { %1064 = vrcp.f32 %v490_v47  ;;  %v492_v49 = vpop.xlane.xlu0 %491 }
 0x25d   : > { %1066 = vrcp.f32 %v492_v49  ;;  %511 = vst [vmem:[%s1389_s12] sm:$0xff] %v503_v48  ;;  %905 = vmatprep.mubr.f32.mxu1 %v503_v48 }
 0x25e   : > { %v1057_v50 = vpop.eup %1056 }
 0x25f   : > { %v1059_v51 = vpop.eup %1058  ;;  %v494_v52 = vpop.xlane.xlu1 %493  ;;  %v504_v53 = vmul.f32 %v1057_v50, %v1041_v21 }
 0x260   : > { %1068 = vrcp.f32 %v494_v52  ;;  %v505_v54 = vmul.f32 %v1059_v51, %v1043_v23 }
 0x261   : > { %512 = vst [vmem:[%s1389_s12 + $0x8] sm:$0xff] %v504_v53  ;;  %906 = vmatmul.mubr.f32.vlgmr.msra.gmra.mrb[0].mxu1 %v504_v53 }
 0x262   : > { %v1061_v55 = vpop.eup %1060  ;;  %513 = vst [vmem:[%s1389_s12 + $0x10] sm:$0xff] %v505_v54  ;;  %908 = vmatprep.mubr.f32.mxu1 %v505_v54 }
 0x263   : > { %v1063_v56 = vpop.eup %1062  ;;  %v506_v57 = vmul.f32 %v1061_v55, %v1347_v24 }
 0x264   : > { %v507_v58 = vmul.f32 %v1063_v56, %v1349_v25 }
 0x265   : > { %514 = vst [vmem:[%s1389_s12 + $0x18] sm:$0xff] %v506_v57  ;;  %909 = vmatmul.mubr.f32.gmra.mrb[2].mxu1 %v506_v57 }
 0x266   : > { %v1065_v59 = vpop.eup %1064  ;;  %515 = vst [vmem:[%s1389_s12 + $0x20] sm:$0xff] %v507_v58  ;;  %911 = vmatprep.mubr.f32.mxu1 %v507_v58 }
 0x267   : > { %v1067_v60 = vpop.eup %1066  ;;  %v508_v61 = vmul.f32 %v1065_v59, %v1353_v26 }
 0x268   : > { %v509_v62 = vmul.f32 %v1067_v60, %v1355_v27 }
 0x269   : > { %516 = vst [vmem:[%s1389_s12 + $0x28] sm:$0xff] %v508_v61  ;;  %912 = vmatmul.mubr.f32.gmra.mrb[4].mxu1 %v508_v61 }
 0x26a   : > { %v1069_v63 = vpop.eup %1068  ;;  %517 = vst [vmem:[%s1389_s12 + $0x30] sm:$0xff] %v509_v62  ;;  %914 = vmatprep.mubr.f32.mxu1 %v509_v62 }
 0x26b   : > { %v510_v0 = vmul.f32 %v1069_v63, %v1365_v31 }
 0x26d   : > { %518 = vst [vmem:[%s1389_s12 + $0x38] sm:$0xff] %v510_v0  ;;  %915 = vmatmul.mubr.f32.gmra.mrb[6].mxu1 %v510_v0 }
 0x26e   : > { %1083 = shalt.err (!%p1080_p3)
}
 0x26f   : > { %s1084_s6 = scalar_lea.hbm %s1409_s27, 1024  ;;  %s1088_s9 = scalar_lea.hbm %s1473_s4, 2048 }
 0x270   : > { %p1085_p4 = scmp.ne.s32.totalorder %s1409_s27, %s1084_s6  ;;  %p1089_p9 = scmp.lt.u32.totalorder %s1409_s27, %s1473_s4 }
 0x271   : > { %p1090_p10 = scmp.lt.u32.totalorder %s1088_s9, %s1084_s6  ;;  %p1092_p12 = scmp.lt.u32.totalorder %s1084_s6, %s1409_s27 }
 0x272   : > { %p1086_p7 = pnand %p1085_p4, %p1200_p5 }
 0x273   : > { %p1091_p11 = por %p1090_p10, %p1089_p9 }
 0x274   : > { %p1087_p8 = pneg %p1086_p7 }
 0x275   : > { %p1093_p13 = por %p1092_p12, %p1091_p11 }
 0x277   : > { %p1094_p0 = pnand %p1093_p13, %p1087_p8 }
 0x279   : > { %1097 = shalt.err (!%p1094_p0)
}
 0x27a   : > { %s1135_s13 = smov 128   ;;  %s1136_s20 = smov 8  }
 0x27b   : > { %997 = dma.vmem_to_hbm [thread:$0]  (%p1200_p5), %s1411_s14, 1024, %s1409_s27, %s1415_s28, %s1135_s13, %s1135_s13, %s1136_s20  }
 0x27c   : > { %s210_s19 = scalar_lea.vmem %s1472_s3, %s748_s10 }
 0x334   : > { %v907_v1 = vpop.f32.mrb[0].mxu1 }
 0x335   : > { %625 = vst.msk [vmem:[%s210_s19 + $0x8] sm:$0xff] %vm261_vm0, %v907_v1  ;;  %v585_v2 = vpop.f32.mrb[1].mxu1 }
 0x336   : > { %624 = vst.msk [vmem:[%s210_s19] sm:$0xff] %vm261_vm0, %v585_v2 }
 0x338   : > { %v910_v3 = vpop.f32.mrb[2].mxu1 }
 0x339   : > { %627 = vst.msk [vmem:[%s210_s19 + $0x18] sm:$0xff] %vm261_vm0, %v910_v3  ;;  %v595_v4 = vpop.f32.mrb[3].mxu1 }
 0x33a   : > { %626 = vst.msk [vmem:[%s210_s19 + $0x10] sm:$0xff] %vm261_vm0, %v595_v4 }
 0x33c   : > { %v913_v5 = vpop.f32.mrb[4].mxu1 }
 0x33d   : > { %629 = vst.msk [vmem:[%s210_s19 + $0x28] sm:$0xff] %vm261_vm0, %v913_v5  ;;  %v605_v6 = vpop.f32.mrb[5].mxu1 }
 0x33e   : > { %628 = vst.msk [vmem:[%s210_s19 + $0x20] sm:$0xff] %vm261_vm0, %v605_v6 }
 0x340   : > { %v916_v7 = vpop.f32.mrb[6].mxu1 }
 0x341   : > { %631 = vst.msk [vmem:[%s210_s19 + $0x38] sm:$0xff] %vm261_vm0, %v916_v7  ;;  %v615_v8 = vpop.f32.mrb[7].mxu1 }
 0x342   : > { %630 = vst.msk [vmem:[%s210_s19 + $0x30] sm:$0xff] %vm261_vm0, %v615_v8 }
 0x343 PF: > { %p1003_p5 = scmp.ge.s32.totalorder %s1132_s18, 2  ;;  %s678_s25 = sand.u32 1, %s1120_s15  }
 0x344   : > { %s679_s7 = scalar_lea.sflag [#allocation3], %s678_s25 }
 0x345   : > { %p1000_p1 = pnand %p1003_p5, %p1204_p6 }
 0x347   : > { %1115 = dma.done.wait (!%p1000_p1), %s679_s7, 1024  }
 0x348   : > { %1117 = vsyncadd (!%p1000_p1), %s679_s7, 4294966272  ;;  %p15_p2 = scmp.ge.s32.totalorder %s1187_s21, 4   ;;  %s1478_s15 = smov %s1124_s16 }
 0x349   : > { %s1479_s16 = smov %s1128_s17  ;;  %s1480_s17 = smov %s1198_s24 }
 0x34a   : > { %s1481_s18 = smov %s1187_s21  ;;  %17 = sbr.rel (!%p15_p2) target bundleno = 3 (0x3), region = 79 }
 0x351   :  { %684 = vsyncpa [#allocation3], 1 }
 0x352   :  { %686 = vsyncpa [#allocation3 + $0x1], 1 }

// kernel: tpu_custom_call.1
= control target key start
LH: loop header
LB: loop body
LE: loop exit
PB: predicated region body
PF: predicated region fallthrough
CT: control target
= control target key end

     0   :  { %10 = vsyncpa [#allocation3], 0  ;;  %s1469_s0 = inlined_call_operand.vmem [shape: f32[128,32], index: 0, kind: input, shape index: {}]   ;;  %s1470_s1 = inlined_call_operand.vmem [shape: f32[128,32], index: 1, kind: input, shape index: {}]   ;;  %s1471_s2 = inlined_call_operand.vmem [shape: f32[128,32], index: 2, kind: input, shape index: {}]   ;;  %s1472_s3 = inlined_call_operand.vmem [shape: f32[128,32], index: 3, kind: output, shape index: {0}]   ;;  %s1473_s4 = inlined_call_operand.hbm [shape: f32[128,128], index: 4, kind: output, shape index: {1}]  }
   0x1   :  { %12 = vsyncpa [#allocation3 + $0x1], 0  ;;  %s1162_s15 = smov 0   ;;  %s1164_s16 = smov 0  }
   0x2   :  { %s1166_s17 = smov 0   ;;  %s1168_s18 = smov 0  }
   0x3 LB: > { %s1183_s19 = sadd.s32 4294967295, %s1132_s18   ;;  %s742_s20 = sadd.s32 4294967294, %s1132_s18   ;;  %s1132_s18 = sphi %s1168_s18, %s1481_s18   ;;  %s1128_s17 = sphi %s1166_s17, %s1480_s17   ;;  %s1124_s16 = sphi %s1164_s16, %s1479_s16   ;;  %s1120_s15 = sphi %s1162_s15, %s1478_s15  }
   0x4   : > { %s1187_s21 = sadd.s32 1, %s1132_s18   ;;  %s119_s22 = sadd.s32 1, %s1128_s17 }
   0x5   : > { %s116_s23 = ssub.s32 %s1132_s18, %s1187_s21  ;;  %p129_p0 = scmp.ne.s32.totalorder %s1128_s17, %s1124_s16 }
   0x6   : > { %p117_p1 = scmp.eq.s32.totalorder %s116_s23, 0  ;;  %p130_p2 = scmp.eq.s32.totalorder %s1183_s19, 1 }
   0x7   : > { %p135_p3 = scmp.ne.s32.totalorder %s1124_s16, %s1120_s15  ;;  %p136_p4 = scmp.eq.s32.totalorder %s742_s20, 1 }
   0x8   : > { %s1198_s24 = scalar_select %p117_p1, %s1128_s17, %s119_s22  }
   0x9   : > { %p1200_p5 = por %p130_p2, %p129_p0  ;;  %p1204_p6 = por %p136_p4, %p135_p3 }
   0xa   : > { %p745_p7 = scmp.ge.s32.totalorder %s1132_s18, 1  ;;  %p169_p8 = scmp.lt.s32.totalorder %s1132_s18, 3 }
   0xc   : > { %p170_p9 = pnand %p745_p7, %p169_p8 }
   0xd   : > { %v221_v0 = vld [vmem:[%s1470_s1] sm:$0xff] (!%p170_p9)  ;;  %v222_v1 = vld [vmem:[%s1470_s1 + $0x8] sm:$0xff] (!%p170_p9)  ;;  %vm261_vm0 = vcmask (!%p170_p9), 261120   ;;  %v223_v2 = vld [vmem:[%s1470_s1 + $0x10] sm:$0xff] (!%p170_p9)  ;;  %s747_s7 = sshll.u32 (!%p170_p9), %s1183_s19, 3  ;;  %s197_s9 = sand.u32 (!%p170_p9), 1, %s1124_s16  }
   0xe   : > { %173 = sbr.rel (%p170_p9) target bundleno = 835 (0x343), region = 32  ;;  %v917_v3 = vpack.c.bf16 (!%p170_p9), %v222_v1, %v221_v0  ;;  %vm1222_vm1 = vmpackc.low (!%p170_p9), %vm261_vm0, %vm261_vm0  ;;  %v224_v5 = vld [vmem:[%s1470_s1 + $0x18] sm:$0xff] (!%p170_p9)  ;;  %p201_p10 = scmp.lt.s32.totalorder (!%p170_p9), %s747_s7, 15  ;;  %v225_v7 = vld [vmem:[%s1470_s1 + $0x20] sm:$0xff] (!%p170_p9) }
   0xf   : > { %v923_v6 = vpack.c.bf16 (!%p170_p9), %v224_v5, %v223_v2  ;;  %v226_v8 = vld [vmem:[%s1470_s1 + $0x28] sm:$0xff] (!%p170_p9)  ;;  %v227_v12 = vld [vmem:[%s1470_s1 + $0x30] sm:$0xff] (!%p170_p9)  ;;  %v228_v13 = vld [vmem:[%s1470_s1 + $0x38] sm:$0xff] (!%p170_p9)  ;;  %s746_s11 = sshll.u32 (!%p170_p9), %s197_s9, 6  ;;  %s780_s13 = sshll.u32 (!%p170_p9), %s1183_s19, 10 }
  0x10   : > { %919 = vmatprep.subr.msk.bf16.mxu0 (!%p170_p9), %vm1222_vm1, %v917_v3  ;;  %v929_v11 = vpack.c.bf16 (!%p170_p9), %v226_v8, %v225_v7  ;;  %v935_v14 = vpack.c.bf16 (!%p170_p9), %v228_v13, %v227_v12  ;;  %v229_v15 = vld [vmem:[%s1470_s1 + $0x40] sm:$0xff] (!%p170_p9)  ;;  %v230_v16 = vld [vmem:[%s1470_s1 + $0x48] sm:$0xff] (!%p170_p9)  ;;  %v231_v18 = vld [vmem:[%s1470_s1 + $0x50] sm:$0xff] (!%p170_p9)  ;;  %s1389_s12 = scalar_lea.vmem (!%p170_p9), [#allocation2], %s746_s11  ;;  %s1409_s27 = scalar_lea.hbm (!%p170_p9), %s1473_s4, %s780_s13 }
  0x11   : > { %922 = vmatpush3.bf16.xpose.msk.msra.mxu0 (!%p170_p9), %vm1222_vm1, %v917_v3  ;;  %v941_v17 = vpack.c.bf16 (!%p170_p9), %v230_v16, %v229_v15  ;;  %v232_v19 = vld [vmem:[%s1470_s1 + $0x58] sm:$0xff] (!%p170_p9)  ;;  %v233_v21 = vld [vmem:[%s1470_s1 + $0x60] sm:$0xff] (!%p170_p9)  ;;  %v234_v22 = vld [vmem:[%s1470_s1 + $0x68] sm:$0xff] (!%p170_p9)  ;;  %s655_s14 = sshll.u32 (!%p170_p9), %s1389_s12, 4  ;;  %s1415_s28 = scalar_lea.sflag (!%p170_p9), [#allocation3], %s197_s9  ;;  %s1411_s14 = int_to_ptr.vmem [resolvable:$true] %s655_s14 }
  0x12   : > { %925 = vmatprep.subr.msk.bf16.mxu0 (!%p170_p9), %vm1222_vm1, %v923_v6  ;;  %v947_v20 = vpack.c.bf16 (!%p170_p9), %v232_v19, %v231_v18  ;;  %v953_v23 = vpack.c.bf16 (!%p170_p9), %v234_v22, %v233_v21  ;;  %v235_v24 = vld [vmem:[%s1470_s1 + $0x70] sm:$0xff] (!%p170_p9)  ;;  %v236_v25 = vld [vmem:[%s1470_s1 + $0x78] sm:$0xff] (!%p170_p9)  ;;  %v237_v49 = vld [vmem:[%s1471_s2] sm:$0xff] (!%p170_p9)  ;;  %s1070_s29 = scalar_lea.vmem (!%p170_p9), %s1411_s14, 1024  ;;  %s1134_s19 = smov (!%p170_p9), [#allocation2]  }
  0x13   : > { %v959_v26 = vpack.c.bf16 (!%p170_p9), %v236_v25, %v235_v24  ;;  %v238_v50 = vld [vmem:[%s1471_s2 + $0x8] sm:$0xff] (!%p170_p9)  ;;  %v239_v51 = vld [vmem:[%s1471_s2 + $0x10] sm:$0xff] (!%p170_p9)  ;;  %v240_v53 = vld [vmem:[%s1471_s2 + $0x18] sm:$0xff] (!%p170_p9)  ;;  %p1071_p11 = scmp.ne.s32.totalorder (!%p170_p9), %s1411_s14, %s1070_s29  ;;  %s1074_s30 = sshll.u32 (!%p170_p9), %s1134_s19, 4  ;;  %s1075_s30 = int_to_ptr.vmem [resolvable:$false] %s1074_s30 }
  0x14   : > { %v965_v52 = vpack.c.bf16 (!%p170_p9), %v238_v50, %v237_v49  ;;  %v969_v54 = vpack.c.bf16 (!%p170_p9), %v240_v53, %v239_v51  ;;  %v241_v55 = vld [vmem:[%s1471_s2 + $0x20] sm:$0xff] (!%p170_p9)  ;;  %v242_v56 = vld [vmem:[%s1471_s2 + $0x28] sm:$0xff] (!%p170_p9)  ;;  %v243_v58 = vld [vmem:[%s1471_s2 + $0x30] sm:$0xff] (!%p170_p9)  ;;  %s1076_s5 = scalar_lea.vmem (!%p170_p9), %s1075_s30, 2048  ;;  %p1077_p0 = scmp.lt.s32.totalorder (!%p170_p9), %s1411_s14, %s1075_s30 }
  0x15   : > { %s1483_s7 = smov (!%p201_p10, %s747_s7), 15  ;;  %v973_v57 = vpack.c.bf16 %v242_v56, %v241_v55  ;;  %v244_v59 = vld [vmem:[%s1471_s2 + $0x38] sm:$0xff]  ;;  %p1072_p12 = pnand %p1071_p11, %p1200_p5 }
  0x16   : > { %s748_s10 = sshll.u32 %s1483_s7, 3  ;;  %966 = vmatprep.subr.bf16.mxu1 %v965_v52  ;;  %v977_v60 = vpack.c.bf16 %v244_v59, %v243_v58  ;;  %p1078_p1 = scmp.lt.s32.totalorder %s1076_s5, %s1070_s29 }
  0x17   : > { %s1249_s23 = scalar_lea.vmem %s1469_s0, %s748_s10  ;;  %968 = vmatpush3.bf16.msra.mxu1 %v965_v52  ;;  %p1073_p13 = pneg %p1072_p12 }
  0x18   : > { %v213_v9 = vld [vmem:[%s1249_s23] sm:$0xff]  ;;  %v214_v27 = vld [vmem:[%s1249_s23 + $0x8] sm:$0xff]  ;;  %v215_v28 = vld [vmem:[%s1249_s23 + $0x10] sm:$0xff]  ;;  %970 = vmatprep.subr.bf16.mxu1 %v969_v54  ;;  %p1079_p2 = por %p1078_p1, %p1077_p0 }
  0x19   : > { %v253_v10 = vmul.f32 0.17677669, %v213_v9  ;;  %928 = vmatpush3.bf16.xpose.msk.msra.mxu0 %vm1222_vm1, %v923_v6  ;;  %v254_v29 = vmul.f32 0.17677669, %v214_v27  ;;  %v255_v30 = vmul.f32 0.17677669, %v215_v28 }
  0x1a   : > { %931 = vmatprep.subr.msk.bf16.mxu0 %vm1222_vm1, %v929_v11  ;;  %v216_v31 = vld [vmem:[%s1249_s23 + $0x18] sm:$0xff]  ;;  %v217_v32 = vld [vmem:[%s1249_s23 + $0x20] sm:$0xff]  ;;  %v218_v35 = vld [vmem:[%s1249_s23 + $0x28] sm:$0xff]  ;;  %p1080_p3 = pnand %p1079_p2, %p1073_p13 }
  0x1b   : > { %861 = vmatprep.mubr.msk.f32.mxu0 %vm261_vm0, %v253_v10  ;;  %v256_v33 = vmul.f32 0.17677669, %v216_v31  ;;  %v257_v34 = vmul.f32 0.17677669, %v217_v32  ;;  %v219_v36 = vld [vmem:[%s1249_s23 + $0x30] sm:$0xff]  ;;  %v220_v39 = vld [vmem:[%s1249_s23 + $0x38] sm:$0xff]  ;;  %972 = vmatpush3.bf16.msra.mxu1 %v969_v54 }
  0x1c   : > { %v258_v37 = vmul.f32 0.17677669, %v218_v35  ;;  %v259_v38 = vmul.f32 0.17677669, %v219_v36  ;;  %v260_v40 = vmul.f32 0.17677669, %v220_v39  ;;  %974 = vmatprep.subr.bf16.mxu1 %v973_v57 }
  0x1d   : > { %v245_v28 = vld [vmem:[%s1471_s2 + $0x40] sm:$0xff]  ;;  %v247_v32 = vld [vmem:[%s1471_s2 + $0x50] sm:$0xff]  ;;  %v250_v36 = vld [vmem:[%s1471_s2 + $0x68] sm:$0xff] }
  0x1e   : > { %v249_v35 = vld [vmem:[%s1471_s2 + $0x60] sm:$0xff]  ;;  %v252_v39 = vld [vmem:[%s1471_s2 + $0x78] sm:$0xff] }
  0x1f   : > { %976 = vmatpush3.bf16.msra.mxu1 %v973_v57 }
  0x20   : > { %978 = vmatprep.subr.bf16.mxu1 %v977_v60 }
  0x21   : > { %934 = vmatpush3.bf16.xpose.msk.msra.mxu0 %vm1222_vm1, %v929_v11 }
  0x22   : > { %937 = vmatprep.subr.msk.bf16.mxu0 %vm1222_vm1, %v935_v14 }
  0x23   : > { %980 = vmatpush3.bf16.msra.mxu1 %v977_v60 }
  0x29   : > { %940 = vmatpush3.bf16.xpose.msk.msra.mxu0 %vm1222_vm1, %v935_v14 }
  0x2a   : > { %943 = vmatprep.subr.msk.bf16.mxu0 %vm1222_vm1, %v941_v17 }
  0x31   : > { %946 = vmatpush3.bf16.xpose.msk.msra.mxu0 %vm1222_vm1, %v941_v17 }
  0x32   : > { %949 = vmatprep.subr.msk.bf16.mxu0 %vm1222_vm1, %v947_v20 }
  0x39   : > { %952 = vmatpush3.bf16.xpose.msk.msra.mxu0 %vm1222_vm1, %v947_v20 }
  0x3a   : > { %955 = vmatprep.subr.msk.bf16.mxu0 %vm1222_vm1, %v953_v23 }
  0x41   : > { %958 = vmatpush3.bf16.xpose.msk.msra.mxu0 %vm1222_vm1, %v953_v23 }
  0x42   : > { %961 = vmatprep.subr.msk.bf16.mxu0 %vm1222_vm1, %v959_v26 }
  0x49   : > { %964 = vmatpush3.bf16.xpose.msk.msra.mxu0 %vm1222_vm1, %v959_v26 }
  0x50   : > { %862 = vmatmul.mubr.msk.f32.vlgmr.msra.gmra.mrb[0].mxu0 %vm261_vm0, %v254_v29  ;;  %v246_v29 = vld [vmem:[%s1471_s2 + $0x48] sm:$0xff] }
  0x51   : > { %864 = vmatprep.mubr.msk.f32.mxu0 %vm261_vm0, %v255_v30  ;;  %v981_v30 = vpack.c.bf16 %v246_v29, %v245_v28 }
  0x53   : > { %982 = vmatprep.subr.bf16.mxu1 %v981_v30 }
  0x54   : > { %865 = vmatmul.mubr.msk.f32.gmra.mrb[2].mxu0 %vm261_vm0, %v256_v33  ;;  %984 = vmatpush3.bf16.msra.mxu1 %v981_v30  ;;  %v248_v33 = vld [vmem:[%s1471_s2 + $0x58] sm:$0xff] }
  0x55   : > { %867 = vmatprep.mubr.msk.f32.mxu0 %vm261_vm0, %v257_v34  ;;  %v985_v34 = vpack.c.bf16 %v248_v33, %v247_v32 }
  0x57   : > { %986 = vmatprep.subr.bf16.mxu1 %v985_v34 }
  0x58   : > { %868 = vmatmul.mubr.msk.f32.gmra.mrb[4].mxu0 %vm261_vm0, %v258_v37  ;;  %988 = vmatpush3.bf16.msra.mxu1 %v985_v34  ;;  %v989_v37 = vpack.c.bf16 %v250_v36, %v249_v35 }
  0x59   : > { %870 = vmatprep.mubr.msk.f32.mxu0 %vm261_vm0, %v259_v38  ;;  %v251_v38 = vld [vmem:[%s1471_s2 + $0x70] sm:$0xff] }
  0x5a   : > { %990 = vmatprep.subr.bf16.mxu1 %v989_v37 }
  0x5c   : > { %871 = vmatmul.mubr.msk.f32.gmra.mrb[6].mxu0 %vm261_vm0, %v260_v40  ;;  %992 = vmatpush3.bf16.msra.mxu1 %v989_v37  ;;  %v993_v40 = vpack.c.bf16 %v252_v39, %v251_v38 }
  0x5e   : > { %994 = vmatprep.subr.bf16.mxu1 %v993_v40 }
  0x60   : > { %996 = vmatpush3.bf16.msra.mxu1 %v993_v40 }
 0x123   : > { %v863_v41 = vpop.f32.mrb[0].mxu0 }
 0x124   : > { %v400_v42 = vpop.f32.mrb[1].mxu0 }
 0x125   : > { %439 = vmax.xlane.f32.xlu0 %v400_v42 }
 0x127   : > { %v866_v43 = vpop.f32.mrb[2].mxu0 }
 0x128   : > { %v410_v44 = vpop.f32.mrb[3].mxu0 }
 0x129   : > { %441 = vmax.xlane.f32.xlu0 %v863_v41  ;;  %443 = vmax.xlane.f32.xlu1 %v410_v44 }
 0x12b   : > { %v869_v45 = vpop.f32.mrb[4].mxu0 }
 0x12c   : > { %v420_v46 = vpop.f32.mrb[5].mxu0 }
 0x12d   : > { %445 = vmax.xlane.f32.xlu1 %v866_v43  ;;  %447 = vmax.xlane.f32.xlu0 %v420_v46 }
 0x12f   : > { %v872_v47 = vpop.f32.mrb[6].mxu0 }
 0x130   : > { %v430_v48 = vpop.f32.mrb[7].mxu0 }
 0x131   : > { %449 = vmax.xlane.f32.xlu1 %v869_v45  ;;  %451 = vmax.xlane.f32.xlu0 %v430_v48 }
 0x135   : > { %453 = vmax.xlane.f32.xlu1 %v872_v47 }
 0x1b2   : > { %v440_v61 = vpop.xlane.xlu0 %439 }
 0x1b3   : > { %v455_v62 = vsub.f32 %v400_v42, %v440_v61 }
 0x1b5   : > { %v463_v63 = vmul.f32 1.442695, %v455_v62 }
 0x1b6   : > { %v442_v0 = vpop.xlane.xlu0 %441  ;;  %v444_v1 = vpop.xlane.xlu1 %443 }
 0x1b7   : > { %1038 = vpow2.f32 %v463_v63  ;;  %v456_v2 = vsub.f32 %v863_v41, %v442_v0  ;;  %v457_v3 = vsub.f32 %v410_v44, %v444_v1 }
 0x1b9   : > { %v465_v4 = vmul.f32 1.442695, %v456_v2  ;;  %v467_v5 = vmul.f32 1.442695, %v457_v3 }
 0x1ba   : > { %v446_v6 = vpop.xlane.xlu1 %445  ;;  %v448_v7 = vpop.xlane.xlu0 %447 }
 0x1bb   : > { %1040 = vpow2.f32 %v465_v4  ;;  %v458_v8 = vsub.f32 %v866_v43, %v446_v6  ;;  %v459_v9 = vsub.f32 %v420_v46, %v448_v7 }
 0x1bc   : > { %1042 = vpow2.f32 %v467_v5 }
 0x1bd   : > { %v469_v10 = vmul.f32 1.442695, %v458_v8  ;;  %v471_v11 = vmul.f32 1.442695, %v459_v9 }
 0x1be   : > { %v450_v12 = vpop.xlane.xlu1 %449  ;;  %v452_v13 = vpop.xlane.xlu0 %451 }
 0x1bf   : > { %1044 = vpow2.f32 %v469_v10  ;;  %v460_v14 = vsub.f32 %v869_v45, %v450_v12  ;;  %v461_v15 = vsub.f32 %v430_v48, %v452_v13 }
 0x1c0   : > { %1046 = vpow2.f32 %v471_v11 }
 0x1c1   : > { %v1039_v16 = vpop.eup %1038  ;;  %v473_v17 = vmul.f32 1.442695, %v460_v14  ;;  %v475_v18 = vmul.f32 1.442695, %v461_v15 }
 0x1c2   : > { %v454_v19 = vpop.xlane.xlu1 %453  ;;  %479 = vadd.xlane.f32.xlu0 %v1039_v16 }
 0x1c3   : > { %1048 = vpow2.f32 %v473_v17  ;;  %v462_v20 = vsub.f32 %v872_v47, %v454_v19 }
 0x1c4   : > { %1050 = vpow2.f32 %v475_v18 }
 0x1c5   : > { %v1041_v21 = vpop.eup %1040  ;;  %v477_v22 = vmul.f32 1.442695, %v462_v20 }
 0x1c6   : > { %v1043_v23 = vpop.eup %1042  ;;  %481 = vadd.xlane.f32.xlu1 %v1041_v21 }
 0x1c7   : > { %1052 = vpow2.f32 %v477_v22  ;;  %483 = vadd.xlane.f32.xlu0 %v1043_v23 }
 0x1c9   : > { %v1347_v24 = vpop.eup %1044 }
 0x1ca   : > { %v1349_v25 = vpop.eup %1046  ;;  %485 = vadd.xlane.f32.xlu1 %v1347_v24 }
 0x1cb   : > { %487 = vadd.xlane.f32.xlu0 %v1349_v25 }
 0x1cd   : > { %v1353_v26 = vpop.eup %1048 }
 0x1ce   : > { %v1355_v27 = vpop.eup %1050  ;;  %489 = vadd.xlane.f32.xlu1 %v1353_v26 }
 0x1cf   : > { %491 = vadd.xlane.f32.xlu0 %v1355_v27 }
 0x1d1   : > { %v1365_v31 = vpop.eup %1052 }
 0x1d2   : > { %493 = vadd.xlane.f32.xlu1 %v1365_v31 }
 0x24f   : > { %v480_v41 = vpop.xlane.xlu0 %479 }
 0x250   : > { %1054 = vrcp.f32 %v480_v41 }
 0x253   : > { %v482_v42 = vpop.xlane.xlu1 %481 }
 0x254   : > { %1056 = vrcp.f32 %v482_v42  ;;  %v484_v43 = vpop.xlane.xlu0 %483 }
 0x255   : > { %1058 = vrcp.f32 %v484_v43 }
 0x257   : > { %v486_v44 = vpop.xlane.xlu1 %485 }
 0x258   : > { %1060 = vrcp.f32 %v486_v44  ;;  %v488_v45 = vpop.xlane.xlu0 %487 }
 0x259   : > { %1062 = vrcp.f32 %v488_v45 }
 0x25a   : > { %v1055_v46 = vpop.eup %1054 }
 0x25b   : > { %v490_v47 = vpop.xlane.xlu1 %489  ;;  %v503_v48 = vmul.f32 %v1055_v46, %v1039_v16 }
 0x25c   : > { %1064 = vrcp.f32 %v490_v47  ;;  %v492_v49 = vpop.xlane.xlu0 %491 }
 0x25d   : > { %1066 = vrcp.f32 %v492_v49  ;;  %511 = vst [vmem:[%s1389_s12] sm:$0xff] %v503_v48  ;;  %905 = vmatprep.mubr.f32.mxu1 %v503_v48 }
 0x25e   : > { %v1057_v50 = vpop.eup %1056 }
 0x25f   : > { %v1059_v51 = vpop.eup %1058  ;;  %v494_v52 = vpop.xlane.xlu1 %493  ;;  %v504_v53 = vmul.f32 %v1057_v50, %v1041_v21 }
 0x260   : > { %1068 = vrcp.f32 %v494_v52  ;;  %v505_v54 = vmul.f32 %v1059_v51, %v1043_v23 }
 0x261   : > { %512 = vst [vmem:[%s1389_s12 + $0x8] sm:$0xff] %v504_v53  ;;  %906 = vmatmul.mubr.f32.vlgmr.msra.gmra.mrb[0].mxu1 %v504_v53 }
 0x262   : > { %v1061_v55 = vpop.eup %1060  ;;  %513 = vst [vmem:[%s1389_s12 + $0x10] sm:$0xff] %v505_v54  ;;  %908 = vmatprep.mubr.f32.mxu1 %v505_v54 }
 0x263   : > { %v1063_v56 = vpop.eup %1062  ;;  %v506_v57 = vmul.f32 %v1061_v55, %v1347_v24 }
 0x264   : > { %v507_v58 = vmul.f32 %v1063_v56, %v1349_v25 }
 0x265   : > { %514 = vst [vmem:[%s1389_s12 + $0x18] sm:$0xff] %v506_v57  ;;  %909 = vmatmul.mubr.f32.gmra.mrb[2].mxu1 %v506_v57 }
 0x266   : > { %v1065_v59 = vpop.eup %1064  ;;  %515 = vst [vmem:[%s1389_s12 + $0x20] sm:$0xff] %v507_v58  ;;  %911 = vmatprep.mubr.f32.mxu1 %v507_v58 }
 0x267   : > { %v1067_v60 = vpop.eup %1066  ;;  %v508_v61 = vmul.f32 %v1065_v59, %v1353_v26 }
 0x268   : > { %v509_v62 = vmul.f32 %v1067_v60, %v1355_v27 }
 0x269   : > { %516 = vst [vmem:[%s1389_s12 + $0x28] sm:$0xff] %v508_v61  ;;  %912 = vmatmul.mubr.f32.gmra.mrb[4].mxu1 %v508_v61 }
 0x26a   : > { %v1069_v63 = vpop.eup %1068  ;;  %517 = vst [vmem:[%s1389_s12 + $0x30] sm:$0xff] %v509_v62  ;;  %914 = vmatprep.mubr.f32.mxu1 %v509_v62 }
 0x26b   : > { %v510_v0 = vmul.f32 %v1069_v63, %v1365_v31 }
 0x26d   : > { %518 = vst [vmem:[%s1389_s12 + $0x38] sm:$0xff] %v510_v0  ;;  %915 = vmatmul.mubr.f32.gmra.mrb[6].mxu1 %v510_v0 }
 0x26e   : > { %1083 = shalt.err (!%p1080_p3)
}
 0x26f   : > { %s1084_s6 = scalar_lea.hbm %s1409_s27, 1024  ;;  %s1088_s9 = scalar_lea.hbm %s1473_s4, 2048 }
 0x270   : > { %p1085_p4 = scmp.ne.s32.totalorder %s1409_s27, %s1084_s6  ;;  %p1089_p9 = scmp.lt.u32.totalorder %s1409_s27, %s1473_s4 }
 0x271   : > { %p1090_p10 = scmp.lt.u32.totalorder %s1088_s9, %s1084_s6  ;;  %p1092_p12 = scmp.lt.u32.totalorder %s1084_s6, %s1409_s27 }
 0x272   : > { %p1086_p7 = pnand %p1085_p4, %p1200_p5 }
 0x273   : > { %p1091_p11 = por %p1090_p10, %p1089_p9 }
 0x274   : > { %p1087_p8 = pneg %p1086_p7 }
 0x275   : > { %p1093_p13 = por %p1092_p12, %p1091_p11 }
 0x277   : > { %p1094_p0 = pnand %p1093_p13, %p1087_p8 }
 0x279   : > { %1097 = shalt.err (!%p1094_p0)
}
 0x27a   : > { %s1135_s13 = smov 128   ;;  %s1136_s20 = smov 8  }
 0x27b   : > { %997 = dma.vmem_to_hbm [thread:$0]  (%p1200_p5), %s1411_s14, 1024, %s1409_s27, %s1415_s28, %s1135_s13, %s1135_s13, %s1136_s20  }
 0x27c   : > { %s210_s19 = scalar_lea.vmem %s1472_s3, %s748_s10 }
 0x334   : > { %v907_v1 = vpop.f32.mrb[0].mxu1 }
 0x335   : > { %625 = vst.msk [vmem:[%s210_s19 + $0x8] sm:$0xff] %vm261_vm0, %v907_v1  ;;  %v585_v2 = vpop.f32.mrb[1].mxu1 }
 0x336   : > { %624 = vst.msk [vmem:[%s210_s19] sm:$0xff] %vm261_vm0, %v585_v2 }
 0x338   : > { %v910_v3 = vpop.f32.mrb[2].mxu1 }
 0x339   : > { %627 = vst.msk [vmem:[%s210_s19 + $0x18] sm:$0xff] %vm261_vm0, %v910_v3  ;;  %v595_v4 = vpop.f32.mrb[3].mxu1 }
 0x33a   : > { %626 = vst.msk [vmem:[%s210_s19 + $0x10] sm:$0xff] %vm261_vm0, %v595_v4 }
 0x33c   : > { %v913_v5 = vpop.f32.mrb[4].mxu1 }
 0x33d   : > { %629 = vst.msk [vmem:[%s210_s19 + $0x28] sm:$0xff] %vm261_vm0, %v913_v5  ;;  %v605_v6 = vpop.f32.mrb[5].mxu1 }
 0x33e   : > { %628 = vst.msk [vmem:[%s210_s19 + $0x20] sm:$0xff] %vm261_vm0, %v605_v6 }
 0x340   : > { %v916_v7 = vpop.f32.mrb[6].mxu1 }
 0x341   : > { %631 = vst.msk [vmem:[%s210_s19 + $0x38] sm:$0xff] %vm261_vm0, %v916_v7  ;;  %v615_v8 = vpop.f32.mrb[7].mxu1 }
 0x342   : > { %630 = vst.msk [vmem:[%s210_s19 + $0x30] sm:$0xff] %vm261_vm0, %v615_v8 }
 0x343 PF: > { %p1003_p5 = scmp.ge.s32.totalorder %s1132_s18, 2  ;;  %s678_s25 = sand.u32 1, %s1120_s15  }
 0x344   : > { %s679_s7 = scalar_lea.sflag [#allocation3], %s678_s25 }
 0x345   : > { %p1000_p1 = pnand %p1003_p5, %p1204_p6 }
 0x347   : > { %1115 = dma.done.wait (!%p1000_p1), %s679_s7, 1024  }
 0x348   : > { %1117 = vsyncadd (!%p1000_p1), %s679_s7, 4294966272  ;;  %p15_p2 = scmp.ge.s32.totalorder %s1187_s21, 4   ;;  %s1478_s15 = smov %s1124_s16 }
 0x349   : > { %s1479_s16 = smov %s1128_s17  ;;  %s1480_s17 = smov %s1198_s24 }
 0x34a   : > { %s1481_s18 = smov %s1187_s21  ;;  %17 = sbr.rel (!%p15_p2) target bundleno = 3 (0x3), region = 79 }
 0x351   :  { %684 = vsyncpa [#allocation3], 1 }
 0x352   :  { %686 = vsyncpa [#allocation3 + $0x1], 1 }

</bundles_post_ra>
